<compile_context>
chip_gen: v7x
topology: tpu7x:2x2x1
jax: 0.10.0
libtpu: 0.0.40
codegen_flags: <defaults>
</compile_context>

<pallas_src>
import math

import jax
import jax.numpy as jnp
from jax.experimental import pallas as pl
from jax.experimental.pallas import tpu as pltpu

TN = 128                      # output-channel tile (lane width; native on all generations)
TM_MAX = 1024                 # M tile (rows of im2col patches)
ACT_DTYPE = jnp.bfloat16      # dtype of intermediate activations written to HBM


def _round_up(x, m):
    return ((x + m - 1) // m) * m


# ----------------------------------------------------------------------------
# Pallas kernels: fused (bf16 matmul on MXU -> f32 acc -> + bias [-> ReLU] -> cast)
# BN scale is pre-folded into the bf16 weights, so the epilogue is add-only.
# ----------------------------------------------------------------------------
def _fused_kernel_relu(x_ref, w_ref, b_ref, o_ref):
    acc = jnp.dot(x_ref[...], w_ref[...], preferred_element_type=jnp.float32)
    o_ref[...] = jnp.maximum(acc + b_ref[...], 0.0).astype(o_ref.dtype)


def _fused_kernel_linear(x_ref, w_ref, b_ref, o_ref):
    acc = jnp.dot(x_ref[...], w_ref[...], preferred_element_type=jnp.float32)
    o_ref[...] = (acc + b_ref[...]).astype(o_ref.dtype)


def fused_matmul(x, w, bias, n_out, relu=True, out_dtype=ACT_DTYPE):
    """out[b] = act(x[b] @ w[b] + bias)[:, :n_out] for every batch slice b.

    x:    (B, M, K)   any float dtype (cast to bf16)
    w:    (B, K, Np)  bf16, Np pre-padded to a multiple of TN, BN scale pre-folded
    bias: (1, Np)     f32 (folded BN bias / conv bias), shared over B
    """
    B, M, K = x.shape
    Bw, Kw, Np = w.shape
    assert B == Bw and K == Kw and Np % TN == 0

    x = x.astype(jnp.bfloat16)
    TM = TM_MAX if M >= TM_MAX else _round_up(M, 16)
    Mp = _round_up(M, TM)
    if Mp != M:
        x = jnp.pad(x, ((0, 0), (0, Mp - M), (0, 0)))

    grid = (B, Mp // TM, Np // TN)
    out_bytes = jnp.dtype(out_dtype).itemsize
    flops = 2 * B * Mp * K * Np
    bytes_accessed = (B * Mp * K * 2                    # LHS, read once per (b, i)
                      + grid[1] * B * K * Np * 2        # weights, refetched per M tile
                      + B * Mp * Np * out_bytes         # output store
                      + Np * 4)                         # bias

    kernel = _fused_kernel_relu if relu else _fused_kernel_linear
    out = pl.pallas_call(
        kernel,
        out_shape=jax.ShapeDtypeStruct((B, Mp, Np), out_dtype),
        grid=grid,
        in_specs=[
            pl.BlockSpec((None, TM, K), lambda b, i, j: (b, i, 0)),   # im2col patch tile (bf16)
            pl.BlockSpec((None, K, TN), lambda b, i, j: (b, 0, j)),   # weight tile (bf16)
            pl.BlockSpec((1, TN), lambda b, i, j: (0, j)),            # folded bias (f32)
        ],
        out_specs=pl.BlockSpec((None, TM, TN), lambda b, i, j: (b, i, j)),
        compiler_params=pltpu.CompilerParams(
            dimension_semantics=("parallel", "parallel", "parallel"),
            vmem_limit_bytes=48 * 1024 * 1024,   # safe on v7x (64 MiB physical VMEM)
        ),
        cost_estimate=pl.CostEstimate(
            flops=flops, transcendentals=0, bytes_accessed=bytes_accessed),
    )(x, w, bias)
    return out[:, :M, :n_out]


# ----------------------------------------------------------------------------
# Plain-JAX glue: im2col (regular conv) and sub-pixel tap gather (transposed conv)
# ----------------------------------------------------------------------------
# TODO(synk): im2col is still materialized in HBM (9x activation expansion for 3x3
# convs); fusing the patch gather into the Pallas kernel via a pl.ANY-space input +
# manual DMA would remove that traffic but is left out of this revision.
def _im2col(x, kh, kw, stride, pt, pb, pleft, pright):
    """x: (N,H,W,C) NHWC -> (N*Ho*Wo, kh*kw*C) patches (kh,kw,C flatten order)."""
    N, H, W, C = x.shape
    xp = jnp.pad(x, ((0, 0), (pt, pb), (pleft, pright), (0, 0)))
    Hp, Wp = H + pt + pb, W + pleft + pright
    Ho = (Hp - kh) // stride + 1
    Wo = (Wp - kw) // stride + 1
    cols = []
    for i in range(kh):
        for j in range(kw):
            cols.append(xp[:, i:i + (Ho - 1) * stride + 1:stride,
                           j:j + (Wo - 1) * stride + 1:stride, :])
    p = jnp.stack(cols, axis=3)  # (N, Ho, Wo, kh*kw, C)
    return p.reshape(N * Ho * Wo, kh * kw * C), (N, Ho, Wo)


def _subpixel_taps(k, s, p, r):
    """Kernel taps contributing to output residue r of a stride-s ConvTranspose.

    Returns [(kernel_index, d)] such that out[s*j + r] += x[j - d] * W[kernel_index].
    """
    taps = []
    for kk in range(k):
        if (kk - r - p) % s == 0:
            taps.append((kk, (kk - r - p) // s))
    return taps


def _gather_taps(x, taps_y, taps_x, nj_y, nj_x):
    """out[n, jy, jx, (ty,tx), c] = x[n, jy - dy, jx - dx, c] (zero-padded OOB),
    flattened to (N*nj_y*nj_x, len(ty)*len(tx)*C)."""
    N, H, W, C = x.shape
    dys = [d for _, d in taps_y]
    dxs = [d for _, d in taps_x]
    pt = max(0, max(dys))
    pb = max(0, nj_y - 1 - min(dys) - (H - 1))
    pleft = max(0, max(dxs))
    pright = max(0, nj_x - 1 - min(dxs) - (W - 1))
    xp = jnp.pad(x, ((0, 0), (pt, pb), (pleft, pright), (0, 0)))
    cols = []
    for _, dy in taps_y:
        for _, dx in taps_x:
            cols.append(xp[:, pt - dy:pt - dy + nj_y, pleft - dx:pleft - dx + nj_x, :])
    p = jnp.stack(cols, axis=3)  # (N, nj_y, nj_x, T, C)
    return p.reshape(N * nj_y * nj_x, len(taps_y) * len(taps_x) * C)


# ----------------------------------------------------------------------------
# Layer applications
# ----------------------------------------------------------------------------
def conv_bn_act(x, p, stride=1, out_dtype=ACT_DTYPE):
    k, pad = p["k"], p["pad"]
    xb = x.astype(jnp.bfloat16)
    cols, (N, Ho, Wo) = _im2col(xb, k, k, stride, pad, pad, pad, pad)
    out = fused_matmul(cols[None], p["w"], p["bias"], p["cout"],
                       relu=p["relu"], out_dtype=out_dtype)
    return out[0].reshape(N, Ho, Wo, p["cout"])


def convt_bn_act(x, p, out_dtype=ACT_DTYPE):
    """ConvTranspose2d + BN + ReLU via sub-pixel decomposition: s*s stride-1 convs
    over the un-dilated input (no structural-zero MXU work), outputs interleaved.
    Residues with equal contraction size run in ONE batched pallas_call."""
    s, k, pad, opad = p["stride"], p["k"], p["pad"], p["opad"]
    N, H, W, C = x.shape
    Ho = (H - 1) * s - 2 * pad + k + opad
    Wo = (W - 1) * s - 2 * pad + k + opad
    assert Ho % s == 0 and Wo % s == 0  # holds for (k=3,s=2,p=1,op=1) and (k=4,s=2,p=1,op=0)
    nj_y, nj_x = Ho // s, Wo // s
    xb = x.astype(jnp.bfloat16)
    cout = p["cout"]

    res_out = {}
    for g in p["groups"]:
        patches = jnp.stack(
            [_gather_taps(xb, ty, tx, nj_y, nj_x) for (ty, tx) in g["taps"]], axis=0)
        o = fused_matmul(patches, g["w"], p["bias"], cout, relu=True,
                         out_dtype=out_dtype)                     # (G, M, cout)
        o = o.reshape(len(g["res"]), N, nj_y, nj_x, cout)
        for idx, (ry, rx) in enumerate(g["res"]):
            res_out[(ry, rx)] = o[idx]

    rows = []
    for ry in range(s):
        row = jnp.stack([res_out[(ry, rx)] for rx in range(s)], axis=3)  # (N,njy,njx,s,C)
        rows.append(row)
    y = jnp.stack(rows, axis=2)                  # (N, nj_y, s_ry, nj_x, s_rx, C)
    return y.reshape(N, Ho, Wo, cout)            # y[:, s*jy+ry, s*jx+rx, :]


# ----------------------------------------------------------------------------
# Deterministic parameter construction (fresh init; eval-mode BN folded directly
# into the bf16 weights; weights pre-padded to the lane tile once at init)
# ----------------------------------------------------------------------------
def _bn_fold(key, c):
    k1, k2 = jax.random.split(key)
    gamma = 1.0 + 0.1 * jax.random.normal(k1, (c,), jnp.float32)
    beta = 0.05 * jax.random.normal(k2, (c,), jnp.float32)
    running_mean = jnp.zeros((c,), jnp.float32)
    running_var = jnp.ones((c,), jnp.float32)
    scale = gamma * jax.lax.rsqrt(running_var + 1e-5)
    bias = beta - running_mean * scale
    return scale, bias


def _pad_vec(v, cout, Np):
    return jnp.pad(v, (0, Np - cout)).reshape(1, Np).astype(jnp.float32)


def make_conv(key, cin, cout, k=3, dilation=1):
    kw_, kb = jax.random.split(key)
    w = jax.random.normal(kw_, (cout, cin, k, k), jnp.float32) / math.sqrt(cin * k * k)
    scale, bias = _bn_fold(kb, cout)
    wmat = jnp.transpose(w, (2, 3, 1, 0)).reshape(k * k * cin, cout)
    wmat = wmat * scale[None, :]                    # fold eval-mode BN scale into W
    Np = _round_up(cout, TN)
    wp = jnp.pad(wmat, ((0, 0), (0, Np - cout))).astype(jnp.bfloat16)[None]  # (1, K, Np)
    pad = (k + 2 * (dilation - 1) - 1) // 2         # dilation==1 everywhere in this net
    return dict(w=wp, bias=_pad_vec(bias, cout, Np), cout=cout, k=k, pad=pad, relu=True)


def make_convt(key, cin, cout, k, stride, pad, opad):
    kw_, kb = jax.random.split(key)
    w = jax.random.normal(kw_, (cin, cout, k, k), jnp.float32) / math.sqrt(cin * k * k)
    scale, bias = _bn_fold(kb, cout)
    # (k, k, cin, cout), direct ConvT form (no flip); fold BN scale into W.
    w_eq = jnp.transpose(w, (2, 3, 0, 1)) * scale[None, None, None, :]
    Np = _round_up(cout, TN)
    taps_axis = [_subpixel_taps(k, stride, pad, r) for r in range(stride)]

    # Group residues with equal contraction size K into one batched matmul.
    groups = {}
    for ry in range(stride):
        for rx in range(stride):
            ty, tx = taps_axis[ry], taps_axis[rx]
            Kg = len(ty) * len(tx) * cin
            sub = jnp.take(w_eq, jnp.array([t for t, _ in ty]), axis=0)
            sub = jnp.take(sub, jnp.array([t for t, _ in tx]), axis=1)
            wmat = sub.reshape(Kg, cout)
            wp = jnp.pad(wmat, ((0, 0), (0, Np - cout))).astype(jnp.bfloat16)
            g = groups.setdefault(Kg, {"res": [], "taps": [], "w": []})
            g["res"].append((ry, rx))
            g["taps"].append((ty, tx))
            g["w"].append(wp)
    group_list = [dict(res=g["res"], taps=g["taps"], w=jnp.stack(g["w"], axis=0))
                  for g in groups.values()]
    return dict(groups=group_list, bias=_pad_vec(bias, cout, Np),
                cout=cout, k=k, stride=stride, pad=pad, opad=opad)


def make_conv1x1_bias(key, cin, cout):
    kw_, kb = jax.random.split(key)
    w = jax.random.normal(kw_, (cout, cin, 1, 1), jnp.float32) / math.sqrt(cin)
    b = 0.01 * jax.random.normal(kb, (cout,), jnp.float32)
    wmat = jnp.transpose(w, (2, 3, 1, 0)).reshape(cin, cout)
    Np = _round_up(cout, TN)
    wp = jnp.pad(wmat, ((0, 0), (0, Np - cout))).astype(jnp.bfloat16)[None]  # (1, K, Np)
    return dict(w=wp, bias=_pad_vec(b, cout, Np), cout=cout, k=1, pad=0, relu=False)


def make_decoder_block(key, cin, cout):
    mid = cin * 2
    k1, k2, k3 = jax.random.split(key, 3)
    return dict(conv1=make_conv(k1, cin, mid, k=3, dilation=1),
                up=make_convt(k2, mid, mid, k=3, stride=2, pad=1, opad=1),
                conv2=make_conv(k3, mid, cout, k=3, dilation=1))


def init_params(key, num_classes=3, in_ch=3):
    soc = [16, 24, 40, 112, 320]  # efficientnet_b0 stage_out_channels
    keys = jax.random.split(key, 12)
    params = {}
    # TODO(synk): the real pretrained EfficientNet-B0 backbone (MBConv/SE blocks) cannot
    # be reproduced in-script; a synthetic stride-2 Conv-BN-ReLU encoder with matching
    # per-stage channels and spatial strides (2,4,8,16,32) stands in for stage0..stage4.
    enc_in = [in_ch] + soc[:-1]
    params["encoder"] = [make_conv(keys[i], enc_in[i], soc[i]) for i in range(5)]
    params["up1"] = make_decoder_block(keys[5], soc[4], soc[3])
    params["up2"] = make_decoder_block(keys[6], soc[3] * 2, soc[2])
    params["up3"] = make_decoder_block(keys[7], soc[2] * 2, soc[1])
    params["up4"] = make_decoder_block(keys[8], soc[1] * 2, soc[0])
    oc_in = soc[0] * 2
    params["outconv_ct"] = make_convt(keys[9], oc_in, oc_in // 2, k=4, stride=2,
                                      pad=1, opad=0)
    params["outconv_final"] = make_conv1x1_bias(keys[10], oc_in // 2, num_classes)
    return params


# ----------------------------------------------------------------------------
# Forward pass
# ----------------------------------------------------------------------------
def decoder_block(p, x, y):
    x = conv_bn_act(x, p["conv1"])
    x = convt_bn_act(x, p["up"])
    x = conv_bn_act(x, p["conv2"])
    # TODO(synk): ChunkConv is not defined in the reference source -> identity on y.
    # DropBlock2d is identity in eval mode (exact).
    return jnp.concatenate([y.astype(ACT_DTYPE), x], axis=-1)  # torch.cat([y, x], dim=1)


def efficient_unet_forward(params, x_nchw):
    x = jnp.transpose(x_nchw, (0, 2, 3, 1))  # NCHW -> NHWC
    feats = []
    h = x
    for p in params["encoder"]:
        h = conv_bn_act(h, p, stride=2)
        feats.append(h)
    e0, e1, e2, e3, e4 = feats
    # TODO(synk): PSAModule is not defined in the reference source -> identity on e4.
    d4 = decoder_block(params["up1"], e4, e3)
    d3 = decoder_block(params["up2"], d4, e2)
    d2 = decoder_block(params["up3"], d3, e1)
    d1 = decoder_block(params["up4"], d2, e0)
    out = convt_bn_act(d1, params["outconv_ct"])                       # ConvT + BN + ReLU
    out = conv_bn_act(out, params["outconv_final"],
                      out_dtype=jnp.float32)                           # 1x1 conv + bias
    return {"out": jnp.transpose(out, (0, 3, 1, 2))}                   # back to NCHW


if __name__ == "__main__":
    key = jax.random.PRNGKey(0)
    pkey, xkey = jax.random.split(key)
    num_classes = 3
    params = init_params(pkey, num_classes=num_classes, in_ch=3)
    x = jax.random.normal(xkey, (2, 3, 32, 32), jnp.float32)  # small NCHW input
    out = efficient_unet_forward(params, x)
    jax.block_until_ready(out)
    assert out["out"].shape == (2, num_classes, 32, 32), out["out"].shape
    assert bool(jnp.all(jnp.isfinite(out["out"])))
    print("KERNEL_OK")
</pallas_src>

<mosaic_0001>
module attributes {stable_mosaic.version = 11 : i64} {
  func.func @_fused_kernel_relu(%arg0: i32, %arg1: i32, %arg2: i32, %arg3: memref<1x512x27xbf16, #tpu.memory_space<vmem>>, %arg4: memref<1x27x128xbf16, #tpu.memory_space<vmem>>, %arg5: memref<1x128xf32, #tpu.memory_space<vmem>>, %arg6: memref<1x512x128xbf16, #tpu.memory_space<vmem>>) attributes {dimension_semantics = [#tpu.dimension_semantics<parallel>, #tpu.dimension_semantics<parallel>, #tpu.dimension_semantics<parallel>], iteration_bounds = array<i64: 1, 1, 1>, scalar_prefetch = 0 : i64, scratch_operands = 0 : i64, tpu.core_type = #tpu.core_type<tc>, window_params = [{transform_indices = @transform_0, window_bounds = array<i64: 1, 512, 27>}, {transform_indices = @transform_1, window_bounds = array<i64: 1, 27, 128>}, {transform_indices = @transform_2, window_bounds = array<i64: 1, 128>}, {transform_indices = @transform_3, window_bounds = array<i64: 1, 512, 128>}]} {
    %c0 = arith.constant 0 : index
    %c0_0 = arith.constant 0 : index
    %c0_1 = arith.constant 0 : index
    %0 = vector.load %arg3[%c0, %c0_0, %c0_1] : memref<1x512x27xbf16, #tpu.memory_space<vmem>>, vector<1x512x27xbf16>
    %1 = vector.shape_cast %0 : vector<1x512x27xbf16> to vector<512x27xbf16>
    %c0_2 = arith.constant 0 : index
    %c0_3 = arith.constant 0 : index
    %c0_4 = arith.constant 0 : index
    %2 = vector.load %arg4[%c0_2, %c0_3, %c0_4] : memref<1x27x128xbf16, #tpu.memory_space<vmem>>, vector<1x27x128xbf16>
    %3 = vector.shape_cast %2 : vector<1x27x128xbf16> to vector<27x128xbf16>
    %cst = arith.constant dense<0.000000e+00> : vector<512x128xf32>
    %4 = tpu.matmul %1, %3, %cst {dimension_numbers = #tpu.dot_dimension_numbers<[1], [0], [0], [1], [0, 0, 1, 1], [], []>} : vector<512x27xbf16>, vector<27x128xbf16>, vector<512x128xf32> -> vector<512x128xf32>
    %c0_5 = arith.constant 0 : index
    %c0_6 = arith.constant 0 : index
    %5 = vector.load %arg5[%c0_5, %c0_6] : memref<1x128xf32, #tpu.memory_space<vmem>>, vector<1x128xf32>
    %6 = vector.broadcast %5 : vector<1x128xf32> to vector<512x128xf32>
    %7 = arith.addf %4, %6 : vector<512x128xf32>
    %cst_7 = arith.constant 0.000000e+00 : f32
    %8 = vector.broadcast %cst_7 : f32 to vector<512x128xf32>
    %9 = arith.maximumf %7, %8 : vector<512x128xf32>
    %10 = arith.truncf %9 : vector<512x128xf32> to vector<512x128xbf16>
    %c0_8 = arith.constant 0 : index
    %c0_9 = arith.constant 0 : index
    %c0_10 = arith.constant 0 : index
    %11 = vector.load %arg6[%c0_8, %c0_9, %c0_10] : memref<1x512x128xbf16, #tpu.memory_space<vmem>>, vector<1x512x128xbf16>
    %12 = vector.shape_cast %11 : vector<1x512x128xbf16> to vector<512x128xbf16>
    %13 = vector.shape_cast %10 : vector<512x128xbf16> to vector<1x512x128xbf16>
    tpu.vector_store %arg6[%c0_8, %c0_9, %c0_10], %13 {strides = array<i32>} : memref<1x512x128xbf16, #tpu.memory_space<vmem>>, vector<1x512x128xbf16>,
    return
  }
  func.func @transform_0(%arg0: i32, %arg1: i32, %arg2: i32) -> (i32, i32, i32) {
    %c0_i32 = arith.constant 0 : i32
    %c0_i32_0 = arith.constant 0 : i32
    return %arg0, %arg1, %c0_i32 : i32, i32, i32
  }
  func.func @transform_1(%arg0: i32, %arg1: i32, %arg2: i32) -> (i32, i32, i32) {
    %c0_i32 = arith.constant 0 : i32
    %c0_i32_0 = arith.constant 0 : i32
    return %arg0, %c0_i32, %arg2 : i32, i32, i32
  }
  func.func @transform_2(%arg0: i32, %arg1: i32, %arg2: i32) -> (i32, i32) {
    %c0_i32 = arith.constant 0 : i32
    %c0_i32_0 = arith.constant 0 : i32
    return %c0_i32, %arg2 : i32, i32
  }
  func.func @transform_3(%arg0: i32, %arg1: i32, %arg2: i32) -> (i32, i32, i32) {
    %c0_i32 = arith.constant 0 : i32
    return %arg0, %arg1, %arg2 : i32, i32, i32
  }
}

</mosaic_0001>

<bundles_post_ra>
// kernel: tpu_custom_call.1
= control target key start
LH: loop header
LB: loop body
LE: loop exit
PB: predicated region body
PF: predicated region fallthrough
CT: control target
= control target key end

     0   :  { %vm359_vm0 = vcmask 1044480   ;;  %vm360_vm1 = vcmask 1045504   ;;  %v1609_v2 = vmov 65535   ;;  %vm262_vm2 = vcmask 220160   ;;  %s1848_s0 = inlined_call_operand.vmem [shape: bf16[1,512,27], index: 0, kind: input, shape index: {}]   ;;  %s1849_s1 = inlined_call_operand.vmem [shape: bf16[1,27,128], index: 1, kind: input, shape index: {}]   ;;  %s1850_s2 = inlined_call_operand.vmem [shape: f32[1,128], index: 2, kind: input, shape index: {}]   ;;  %s1851_s3 = inlined_call_operand.hbm [shape: bf16[1,512,128], index: 3, kind: output, shape index: {}]  }
   0x1   :  { %v1551_v0 = vld [vmem:[%s1849_s1] sm:$0xff]   ;;  %v1552_v1 = vld [vmem:[%s1849_s1 + $0x8] sm:$0x3f]   ;;  %v361_v3 = vsel %vm359_vm0, 4294967295, %v1609_v2  ;;  %v1557_v10 = vld [vmem:[%s1848_s0 + $0x10] sm:$0xff]  }
   0x2   :  { %1475 = vmatprep.subr.bf16.mxu0 %v1551_v0  ;;  %1543 = vmatprep.subr.bf16.mxu1 %v1551_v0  ;;  %v1553_v4 = vld [vmem:[%s1848_s0] sm:$0xff]   ;;  %v362_v6 = vsel %vm360_vm1, %v361_v3, 0  ;;  %v1555_v8 = vld [vmem:[%s1848_s0 + $0x8] sm:$0xff]   ;;  %v1558_v11 = vld [vmem:[%s1848_s0 + $0x90] sm:$0xff]  }
   0x3   :  { %1476 = vmatpush3.bf16.msra.mxu0 %v1551_v0  ;;  %1545 = vmatpush3.bf16.msra.mxu1 %v1551_v0  ;;  %v1554_v5 = vld [vmem:[%s1848_s0 + $0x80] sm:$0xff]   ;;  %v364_v7 = vand.u32 %v1552_v1, %v362_v6  ;;  %v1556_v9 = vld [vmem:[%s1848_s0 + $0x88] sm:$0xff]   ;;  %v1559_v12 = vld [vmem:[%s1848_s0 + $0x18] sm:$0xff]  }
   0x4   :  { %1479 = vmatprep.mubr.msk.bf16.mxu0 %vm262_vm2, %v1553_v4  ;;  %1511 = vmatprep.mubr.msk.bf16.mxu1 %vm262_vm2, %v1554_v5  ;;  %v1560_v13 = vld [vmem:[%s1848_s0 + $0x98] sm:$0xff]   ;;  %v1561_v14 = vld [vmem:[%s1848_s0 + $0x20] sm:$0xff]   ;;  %v1563_v16 = vld [vmem:[%s1848_s0 + $0x28] sm:$0xff]  }
   0x5   :  { %1477 = vmatprep.subr.bf16.mxu0 %v364_v7  ;;  %1544 = vmatprep.subr.bf16.mxu1 %v364_v7  ;;  %v1562_v15 = vld [vmem:[%s1848_s0 + $0xa0] sm:$0xff]   ;;  %v1564_v17 = vld [vmem:[%s1848_s0 + $0xa8] sm:$0xff]   ;;  %v1565_v18 = vld [vmem:[%s1848_s0 + $0x30] sm:$0xff]  }
   0x6   :  { %v1566_v19 = vld [vmem:[%s1848_s0 + $0xb0] sm:$0xff]   ;;  %v1567_v20 = vld [vmem:[%s1848_s0 + $0x38] sm:$0xff]   ;;  %v1569_v22 = vld [vmem:[%s1848_s0 + $0x40] sm:$0xff]  }
   0x7   :  { %1478 = vmatpush3.bf16.msra.mxu0 %v364_v7  ;;  %1546 = vmatpush3.bf16.msra.mxu1 %v364_v7  ;;  %v1568_v21 = vld [vmem:[%s1848_s0 + $0xb8] sm:$0xff]   ;;  %v1570_v23 = vld [vmem:[%s1848_s0 + $0xc0] sm:$0xff]  }
   0xa   :  { %1480 = vmatmul.mubr.msk.bf16.vlgmr.msra.gmra.mrb[0].mxu0 %vm262_vm2, %v1555_v8  ;;  %1512 = vmatmul.mubr.msk.bf16.vlgmr.msra.gmra.mrb[0].mxu1 %vm262_vm2, %v1556_v9 }
   0xb   :  { %1483 = vmatprep.mubr.msk.bf16.mxu0 %vm262_vm2, %v1557_v10  ;;  %1515 = vmatprep.mubr.msk.bf16.mxu1 %vm262_vm2, %v1558_v11 }
  0x12   :  { %1484 = vmatmul.mubr.msk.bf16.gmra.mrb[4].mxu0 %vm262_vm2, %v1559_v12  ;;  %1516 = vmatmul.mubr.msk.bf16.gmra.mrb[4].mxu1 %vm262_vm2, %v1560_v13 }
  0x13   :  { %1487 = vmatprep.mubr.msk.bf16.mxu0 %vm262_vm2, %v1561_v14  ;;  %1519 = vmatprep.mubr.msk.bf16.mxu1 %vm262_vm2, %v1562_v15 }
  0x1a   :  { %1488 = vmatmul.mubr.msk.bf16.gmra.mrb[8].mxu0 %vm262_vm2, %v1563_v16  ;;  %1520 = vmatmul.mubr.msk.bf16.gmra.mrb[8].mxu1 %vm262_vm2, %v1564_v17 }
  0x1b   :  { %1491 = vmatprep.mubr.msk.bf16.mxu0 %vm262_vm2, %v1565_v18  ;;  %1523 = vmatprep.mubr.msk.bf16.mxu1 %vm262_vm2, %v1566_v19 }
  0x1c   :  { %8 = vsyncpa [#allocation3], 0  ;;  %v1571_v24 = vld [vmem:[%s1848_s0 + $0x48] sm:$0xff]   ;;  %v1573_v26 = vld [vmem:[%s1848_s0 + $0x50] sm:$0xff]  }
  0x1d   :  { %v1572_v25 = vld [vmem:[%s1848_s0 + $0xc8] sm:$0xff]   ;;  %v1574_v27 = vld [vmem:[%s1848_s0 + $0xd0] sm:$0xff]   ;;  %v1575_v28 = vld [vmem:[%s1848_s0 + $0x58] sm:$0xff]  }
  0x1e   :  { %v1576_v29 = vld [vmem:[%s1848_s0 + $0xd8] sm:$0xff]   ;;  %v1577_v30 = vld [vmem:[%s1848_s0 + $0x60] sm:$0xff]   ;;  %v1579_v32 = vld [vmem:[%s1848_s0 + $0x68] sm:$0xff]  }
  0x1f   :  { %v1578_v31 = vld [vmem:[%s1848_s0 + $0xe0] sm:$0xff]   ;;  %v1580_v33 = vld [vmem:[%s1848_s0 + $0xe8] sm:$0xff]   ;;  %v1581_v34 = vld [vmem:[%s1848_s0 + $0x70] sm:$0xff]  }
  0x20   :  { %v1582_v35 = vld [vmem:[%s1848_s0 + $0xf0] sm:$0xff]   ;;  %v1583_v36 = vld [vmem:[%s1848_s0 + $0x78] sm:$0xff]   ;;  %v1770_v38 = vld [vmem:[%s1850_s2] ss:$0 sm:$0xff] }
  0x21   :  { %v1584_v37 = vld [vmem:[%s1848_s0 + $0xf8] sm:$0xff]   ;;  %s1610_s0 = smov [#allocation2]  }
  0x22   :  { %1492 = vmatmul.mubr.msk.bf16.gmra.mrb[12].mxu0 %vm262_vm2, %v1567_v20  ;;  %1524 = vmatmul.mubr.msk.bf16.gmra.mrb[12].mxu1 %vm262_vm2, %v1568_v21  ;;  %s1044_s2 = sshll.u32 %s1610_s0, 4  ;;  %s1045_s2 = int_to_ptr.vmem [resolvable:$true] %s1044_s2 }
  0x23   :  { %1495 = vmatprep.mubr.msk.bf16.mxu0 %vm262_vm2, %v1569_v22  ;;  %1527 = vmatprep.mubr.msk.bf16.mxu1 %vm262_vm2, %v1570_v23  ;;  %s1585_s25 = scalar_lea.vmem %s1045_s2, 4096  ;;  %p1590_p1 = scmp.lt.s32.totalorder %s1045_s2, %s1045_s2 }
  0x24   :  { %p1586_p0 = scmp.ne.s32.totalorder %s1045_s2, %s1585_s25  ;;  %p1591_p2 = scmp.lt.s32.totalorder %s1585_s25, %s1585_s25 }
  0x26   :  { %p1592_p3 = por %p1591_p2, %p1590_p1 }
  0x28   :  { %p1593_p4 = pnand %p1592_p3, %p1586_p0 }
  0x2a   :  { %1496 = vmatmul.mubr.msk.bf16.gmra.mrb[16].mxu0 %vm262_vm2, %v1571_v24  ;;  %1528 = vmatmul.mubr.msk.bf16.gmra.mrb[16].mxu1 %vm262_vm2, %v1572_v25 }
  0x2b   :  { %1499 = vmatprep.mubr.msk.bf16.mxu0 %vm262_vm2, %v1573_v26  ;;  %1531 = vmatprep.mubr.msk.bf16.mxu1 %vm262_vm2, %v1574_v27 }
  0x32   :  { %1500 = vmatmul.mubr.msk.bf16.gmra.mrb[20].mxu0 %vm262_vm2, %v1575_v28  ;;  %1532 = vmatmul.mubr.msk.bf16.gmra.mrb[20].mxu1 %vm262_vm2, %v1576_v29 }
  0x33   :  { %1503 = vmatprep.mubr.msk.bf16.mxu0 %vm262_vm2, %v1577_v30  ;;  %1535 = vmatprep.mubr.msk.bf16.mxu1 %vm262_vm2, %v1578_v31 }
  0x3a   :  { %1504 = vmatmul.mubr.msk.bf16.gmra.mrb[24].mxu0 %vm262_vm2, %v1579_v32  ;;  %1536 = vmatmul.mubr.msk.bf16.gmra.mrb[24].mxu1 %vm262_vm2, %v1580_v33 }
  0x3b   :  { %1507 = vmatprep.mubr.msk.bf16.mxu0 %vm262_vm2, %v1581_v34  ;;  %1539 = vmatprep.mubr.msk.bf16.mxu1 %vm262_vm2, %v1582_v35 }
  0x42   :  { %1508 = vmatmul.mubr.msk.bf16.gmra.mrb[28].mxu0 %vm262_vm2, %v1583_v36  ;;  %1540 = vmatmul.mubr.msk.bf16.gmra.mrb[28].mxu1 %vm262_vm2, %v1584_v37 }
  0xdd   :  { %v1481_v39 = vpop.f32.mrb[0].mxu0  ;;  %v1513_v40 = vpop.f32.mrb[0].mxu1 }
  0xde   :  { %v409_v41 = vadd.f32 %v1481_v39, %v1770_v38  ;;  %v537_v42 = vadd.f32 %v1513_v40, %v1770_v38  ;;  %v400_v43 = vpop.f32.mrb[1].mxu0  ;;  %v528_v44 = vpop.f32.mrb[1].mxu1 }
  0xdf   :  { %v401_v45 = vadd.f32 %v1770_v38, %v400_v43  ;;  %v529_v46 = vadd.f32 %v1770_v38, %v528_v44  ;;  %v1482_v47 = vpop.f32.mrb[2].mxu0  ;;  %v1514_v48 = vpop.f32.mrb[2].mxu1 }
  0xe0   :  { %v412_v49 = vadd.f32 %v1482_v47, %v1770_v38  ;;  %v540_v50 = vadd.f32 %v1514_v48, %v1770_v38  ;;  %v403_v51 = vpop.f32.mrb[3].mxu0  ;;  %v531_v52 = vpop.f32.mrb[3].mxu1  ;;  %v657_v55 = vmax.f32 %v409_v41, 0.0  ;;  %v689_v56 = vmax.f32 %v537_v42, 0.0 }
  0xe1   :  { %v404_v53 = vadd.f32 %v1770_v38, %v403_v51  ;;  %v532_v54 = vadd.f32 %v1770_v38, %v531_v52  ;;  %v655_v59 = vmax.f32 %v401_v45, 0.0  ;;  %v687_v60 = vmax.f32 %v529_v46, 0.0 }
  0xe2   :  { %v658_v57 = vmax.f32 %v412_v49, 0.0  ;;  %v690_v58 = vmax.f32 %v540_v50, 0.0 }
  0xe3   :  { %v656_v61 = vmax.f32 %v404_v53, 0.0  ;;  %v688_v62 = vmax.f32 %v532_v54, 0.0 }
  0xe4   :  { %v1258_v63 = vpack.c.bf16 %v658_v57, %v657_v55  ;;  %v1338_v0 = vpack.c.bf16 %v690_v58, %v689_v56 }
  0xe5   :  { %v1253_v1 = vpack.c.bf16 %v656_v61, %v655_v59  ;;  %v1333_v2 = vpack.c.bf16 %v688_v62, %v687_v60  ;;  %v1485_v3 = vpop.f32.mrb[4].mxu0  ;;  %v1517_v4 = vpop.f32.mrb[4].mxu1 }
  0xe6   :  { %1410 = vst [vmem:[#allocation2 + $0x8] sm:$0xff] %v1258_v63   ;;  %1426 = vst [vmem:[#allocation2 + $0x88] sm:$0xff] %v1338_v0   ;;  %v425_v5 = vadd.f32 %v1485_v3, %v1770_v38  ;;  %v553_v6 = vadd.f32 %v1517_v4, %v1770_v38  ;;  %v416_v7 = vpop.f32.mrb[5].mxu0  ;;  %v544_v8 = vpop.f32.mrb[5].mxu1 }
  0xe7   :  { %1254 = vst [vmem:[#allocation2] sm:$0xff] %v1253_v1   ;;  %1425 = vst [vmem:[#allocation2 + $0x80] sm:$0xff] %v1333_v2   ;;  %v417_v9 = vadd.f32 %v1770_v38, %v416_v7  ;;  %v545_v10 = vadd.f32 %v1770_v38, %v544_v8  ;;  %v1486_v11 = vpop.f32.mrb[6].mxu0  ;;  %v1518_v12 = vpop.f32.mrb[6].mxu1 }
  0xe8   :  { %v428_v13 = vadd.f32 %v1486_v11, %v1770_v38  ;;  %v556_v14 = vadd.f32 %v1518_v12, %v1770_v38  ;;  %v419_v15 = vpop.f32.mrb[7].mxu0  ;;  %v547_v16 = vpop.f32.mrb[7].mxu1  ;;  %v661_v19 = vmax.f32 %v425_v5, 0.0  ;;  %v693_v20 = vmax.f32 %v553_v6, 0.0 }
  0xe9   :  { %v420_v17 = vadd.f32 %v1770_v38, %v419_v15  ;;  %v548_v18 = vadd.f32 %v1770_v38, %v547_v16  ;;  %v659_v23 = vmax.f32 %v417_v9, 0.0  ;;  %v691_v24 = vmax.f32 %v545_v10, 0.0 }
  0xea   :  { %v662_v21 = vmax.f32 %v428_v13, 0.0  ;;  %v694_v22 = vmax.f32 %v556_v14, 0.0 }
  0xeb   :  { %v660_v25 = vmax.f32 %v420_v17, 0.0  ;;  %v692_v26 = vmax.f32 %v548_v18, 0.0 }
  0xec   :  { %v1268_v27 = vpack.c.bf16 %v662_v21, %v661_v19  ;;  %v1348_v28 = vpack.c.bf16 %v694_v22, %v693_v20 }
  0xed   :  { %v1263_v29 = vpack.c.bf16 %v660_v25, %v659_v23  ;;  %v1343_v30 = vpack.c.bf16 %v692_v26, %v691_v24  ;;  %v1489_v31 = vpop.f32.mrb[8].mxu0  ;;  %v1521_v32 = vpop.f32.mrb[8].mxu1 }
  0xee   :  { %1412 = vst [vmem:[#allocation2 + $0x18] sm:$0xff] %v1268_v27   ;;  %1428 = vst [vmem:[#allocation2 + $0x98] sm:$0xff] %v1348_v28   ;;  %v441_v33 = vadd.f32 %v1489_v31, %v1770_v38  ;;  %v569_v34 = vadd.f32 %v1521_v32, %v1770_v38  ;;  %v432_v35 = vpop.f32.mrb[9].mxu0  ;;  %v560_v36 = vpop.f32.mrb[9].mxu1 }
  0xef   :  { %1411 = vst [vmem:[#allocation2 + $0x10] sm:$0xff] %v1263_v29   ;;  %1427 = vst [vmem:[#allocation2 + $0x90] sm:$0xff] %v1343_v30   ;;  %v433_v37 = vadd.f32 %v1770_v38, %v432_v35  ;;  %v561_v39 = vadd.f32 %v1770_v38, %v560_v36  ;;  %v1490_v40 = vpop.f32.mrb[10].mxu0  ;;  %v1522_v41 = vpop.f32.mrb[10].mxu1 }
  0xf0   :  { %v444_v42 = vadd.f32 %v1490_v40, %v1770_v38  ;;  %v572_v43 = vadd.f32 %v1522_v41, %v1770_v38  ;;  %v435_v44 = vpop.f32.mrb[11].mxu0  ;;  %v563_v45 = vpop.f32.mrb[11].mxu1  ;;  %v665_v48 = vmax.f32 %v441_v33, 0.0  ;;  %v697_v49 = vmax.f32 %v569_v34, 0.0 }
  0xf1   :  { %v436_v46 = vadd.f32 %v1770_v38, %v435_v44  ;;  %v564_v47 = vadd.f32 %v1770_v38, %v563_v45  ;;  %v663_v52 = vmax.f32 %v433_v37, 0.0  ;;  %v695_v53 = vmax.f32 %v561_v39, 0.0 }
  0xf2   :  { %v666_v50 = vmax.f32 %v444_v42, 0.0  ;;  %v698_v51 = vmax.f32 %v572_v43, 0.0 }
  0xf3   :  { %v664_v54 = vmax.f32 %v436_v46, 0.0  ;;  %v696_v55 = vmax.f32 %v564_v47, 0.0 }
  0xf4   :  { %v1278_v56 = vpack.c.bf16 %v666_v50, %v665_v48  ;;  %v1358_v57 = vpack.c.bf16 %v698_v51, %v697_v49 }
  0xf5   :  { %v1273_v58 = vpack.c.bf16 %v664_v54, %v663_v52  ;;  %v1353_v59 = vpack.c.bf16 %v696_v55, %v695_v53  ;;  %v1493_v60 = vpop.f32.mrb[12].mxu0  ;;  %v1525_v61 = vpop.f32.mrb[12].mxu1 }
  0xf6   :  { %1414 = vst [vmem:[#allocation2 + $0x28] sm:$0xff] %v1278_v56   ;;  %1430 = vst [vmem:[#allocation2 + $0xa8] sm:$0xff] %v1358_v57   ;;  %v457_v62 = vadd.f32 %v1493_v60, %v1770_v38  ;;  %v585_v63 = vadd.f32 %v1525_v61, %v1770_v38  ;;  %v448_v0 = vpop.f32.mrb[13].mxu0  ;;  %v576_v1 = vpop.f32.mrb[13].mxu1 }
  0xf7   :  { %1413 = vst [vmem:[#allocation2 + $0x20] sm:$0xff] %v1273_v58   ;;  %1429 = vst [vmem:[#allocation2 + $0xa0] sm:$0xff] %v1353_v59   ;;  %v449_v2 = vadd.f32 %v1770_v38, %v448_v0  ;;  %v577_v3 = vadd.f32 %v1770_v38, %v576_v1  ;;  %v1494_v4 = vpop.f32.mrb[14].mxu0  ;;  %v1526_v5 = vpop.f32.mrb[14].mxu1 }
  0xf8   :  { %v460_v6 = vadd.f32 %v1494_v4, %v1770_v38  ;;  %v588_v7 = vadd.f32 %v1526_v5, %v1770_v38  ;;  %v451_v8 = vpop.f32.mrb[15].mxu0  ;;  %v579_v9 = vpop.f32.mrb[15].mxu1  ;;  %v669_v12 = vmax.f32 %v457_v62, 0.0  ;;  %v701_v13 = vmax.f32 %v585_v63, 0.0 }
  0xf9   :  { %v452_v10 = vadd.f32 %v1770_v38, %v451_v8  ;;  %v580_v11 = vadd.f32 %v1770_v38, %v579_v9  ;;  %v667_v16 = vmax.f32 %v449_v2, 0.0  ;;  %v699_v17 = vmax.f32 %v577_v3, 0.0 }
  0xfa   :  { %v670_v14 = vmax.f32 %v460_v6, 0.0  ;;  %v702_v15 = vmax.f32 %v588_v7, 0.0 }
  0xfb   :  { %v668_v18 = vmax.f32 %v452_v10, 0.0  ;;  %v700_v19 = vmax.f32 %v580_v11, 0.0 }
  0xfc   :  { %v1288_v20 = vpack.c.bf16 %v670_v14, %v669_v12  ;;  %v1368_v21 = vpack.c.bf16 %v702_v15, %v701_v13 }
  0xfd   :  { %v1283_v22 = vpack.c.bf16 %v668_v18, %v667_v16  ;;  %v1363_v23 = vpack.c.bf16 %v700_v19, %v699_v17  ;;  %v1497_v24 = vpop.f32.mrb[16].mxu0  ;;  %v1529_v25 = vpop.f32.mrb[16].mxu1 }
  0xfe   :  { %1416 = vst [vmem:[#allocation2 + $0x38] sm:$0xff] %v1288_v20   ;;  %1432 = vst [vmem:[#allocation2 + $0xb8] sm:$0xff] %v1368_v21   ;;  %v473_v26 = vadd.f32 %v1497_v24, %v1770_v38  ;;  %v601_v27 = vadd.f32 %v1529_v25, %v1770_v38  ;;  %v464_v28 = vpop.f32.mrb[17].mxu0  ;;  %v592_v29 = vpop.f32.mrb[17].mxu1 }
  0xff   :  { %1415 = vst [vmem:[#allocation2 + $0x30] sm:$0xff] %v1283_v22   ;;  %1431 = vst [vmem:[#allocation2 + $0xb0] sm:$0xff] %v1363_v23   ;;  %v465_v30 = vadd.f32 %v1770_v38, %v464_v28  ;;  %v593_v31 = vadd.f32 %v1770_v38, %v592_v29  ;;  %v1498_v32 = vpop.f32.mrb[18].mxu0  ;;  %v1530_v33 = vpop.f32.mrb[18].mxu1 }
 0x100   :  { %v476_v34 = vadd.f32 %v1498_v32, %v1770_v38  ;;  %v604_v35 = vadd.f32 %v1530_v33, %v1770_v38  ;;  %v467_v36 = vpop.f32.mrb[19].mxu0  ;;  %v595_v37 = vpop.f32.mrb[19].mxu1  ;;  %v673_v41 = vmax.f32 %v473_v26, 0.0  ;;  %v705_v42 = vmax.f32 %v601_v27, 0.0 }
 0x101   :  { %v468_v39 = vadd.f32 %v1770_v38, %v467_v36  ;;  %v596_v40 = vadd.f32 %v1770_v38, %v595_v37  ;;  %v671_v45 = vmax.f32 %v465_v30, 0.0  ;;  %v703_v46 = vmax.f32 %v593_v31, 0.0 }
 0x102   :  { %v674_v43 = vmax.f32 %v476_v34, 0.0  ;;  %v706_v44 = vmax.f32 %v604_v35, 0.0 }
 0x103   :  { %v672_v47 = vmax.f32 %v468_v39, 0.0  ;;  %v704_v48 = vmax.f32 %v596_v40, 0.0 }
 0x104   :  { %v1298_v49 = vpack.c.bf16 %v674_v43, %v673_v41  ;;  %v1378_v50 = vpack.c.bf16 %v706_v44, %v705_v42 }
 0x105   :  { %v1293_v51 = vpack.c.bf16 %v672_v47, %v671_v45  ;;  %v1373_v52 = vpack.c.bf16 %v704_v48, %v703_v46  ;;  %v1501_v53 = vpop.f32.mrb[20].mxu0  ;;  %v1533_v54 = vpop.f32.mrb[20].mxu1 }
 0x106   :  { %1418 = vst [vmem:[#allocation2 + $0x48] sm:$0xff] %v1298_v49   ;;  %1434 = vst [vmem:[#allocation2 + $0xc8] sm:$0xff] %v1378_v50   ;;  %v489_v55 = vadd.f32 %v1501_v53, %v1770_v38  ;;  %v617_v56 = vadd.f32 %v1533_v54, %v1770_v38  ;;  %v480_v57 = vpop.f32.mrb[21].mxu0  ;;  %v608_v58 = vpop.f32.mrb[21].mxu1 }
 0x107   :  { %1417 = vst [vmem:[#allocation2 + $0x40] sm:$0xff] %v1293_v51   ;;  %1433 = vst [vmem:[#allocation2 + $0xc0] sm:$0xff] %v1373_v52   ;;  %v481_v59 = vadd.f32 %v1770_v38, %v480_v57  ;;  %v609_v60 = vadd.f32 %v1770_v38, %v608_v58  ;;  %v1502_v61 = vpop.f32.mrb[22].mxu0  ;;  %v1534_v62 = vpop.f32.mrb[22].mxu1 }
 0x108   :  { %v492_v63 = vadd.f32 %v1502_v61, %v1770_v38  ;;  %v620_v0 = vadd.f32 %v1534_v62, %v1770_v38  ;;  %v483_v1 = vpop.f32.mrb[23].mxu0  ;;  %v611_v2 = vpop.f32.mrb[23].mxu1  ;;  %v677_v5 = vmax.f32 %v489_v55, 0.0  ;;  %v709_v6 = vmax.f32 %v617_v56, 0.0 }
 0x109   :  { %v484_v3 = vadd.f32 %v1770_v38, %v483_v1  ;;  %v612_v4 = vadd.f32 %v1770_v38, %v611_v2  ;;  %v675_v9 = vmax.f32 %v481_v59, 0.0  ;;  %v707_v10 = vmax.f32 %v609_v60, 0.0 }
 0x10a   :  { %v678_v7 = vmax.f32 %v492_v63, 0.0  ;;  %v710_v8 = vmax.f32 %v620_v0, 0.0 }
 0x10b   :  { %v676_v11 = vmax.f32 %v484_v3, 0.0  ;;  %v708_v12 = vmax.f32 %v612_v4, 0.0 }
 0x10c   :  { %v1308_v13 = vpack.c.bf16 %v678_v7, %v677_v5  ;;  %v1388_v14 = vpack.c.bf16 %v710_v8, %v709_v6 }
 0x10d   :  { %v1303_v15 = vpack.c.bf16 %v676_v11, %v675_v9  ;;  %v1383_v16 = vpack.c.bf16 %v708_v12, %v707_v10  ;;  %v1505_v17 = vpop.f32.mrb[24].mxu0  ;;  %v1537_v18 = vpop.f32.mrb[24].mxu1 }
 0x10e   :  { %1420 = vst [vmem:[#allocation2 + $0x58] sm:$0xff] %v1308_v13   ;;  %1436 = vst [vmem:[#allocation2 + $0xd8] sm:$0xff] %v1388_v14   ;;  %v505_v19 = vadd.f32 %v1505_v17, %v1770_v38  ;;  %v633_v20 = vadd.f32 %v1537_v18, %v1770_v38  ;;  %v496_v21 = vpop.f32.mrb[25].mxu0  ;;  %v624_v22 = vpop.f32.mrb[25].mxu1 }
 0x10f   :  { %1419 = vst [vmem:[#allocation2 + $0x50] sm:$0xff] %v1303_v15   ;;  %1435 = vst [vmem:[#allocation2 + $0xd0] sm:$0xff] %v1383_v16   ;;  %v497_v23 = vadd.f32 %v1770_v38, %v496_v21  ;;  %v625_v24 = vadd.f32 %v1770_v38, %v624_v22  ;;  %v1506_v25 = vpop.f32.mrb[26].mxu0  ;;  %v1538_v26 = vpop.f32.mrb[26].mxu1 }
 0x110   :  { %v508_v27 = vadd.f32 %v1506_v25, %v1770_v38  ;;  %v636_v28 = vadd.f32 %v1538_v26, %v1770_v38  ;;  %v499_v29 = vpop.f32.mrb[27].mxu0  ;;  %v627_v30 = vpop.f32.mrb[27].mxu1  ;;  %v681_v33 = vmax.f32 %v505_v19, 0.0  ;;  %v713_v34 = vmax.f32 %v633_v20, 0.0 }
 0x111   :  { %v500_v31 = vadd.f32 %v1770_v38, %v499_v29  ;;  %v628_v32 = vadd.f32 %v1770_v38, %v627_v30  ;;  %v679_v37 = vmax.f32 %v497_v23, 0.0  ;;  %v711_v39 = vmax.f32 %v625_v24, 0.0 }
 0x112   :  { %v682_v35 = vmax.f32 %v508_v27, 0.0  ;;  %v714_v36 = vmax.f32 %v636_v28, 0.0 }
 0x113   :  { %v680_v40 = vmax.f32 %v500_v31, 0.0  ;;  %v712_v41 = vmax.f32 %v628_v32, 0.0 }
 0x114   :  { %v1318_v42 = vpack.c.bf16 %v682_v35, %v681_v33  ;;  %v1398_v43 = vpack.c.bf16 %v714_v36, %v713_v34 }
 0x115   :  { %v1313_v44 = vpack.c.bf16 %v680_v40, %v679_v37  ;;  %v1393_v45 = vpack.c.bf16 %v712_v41, %v711_v39  ;;  %v1509_v46 = vpop.f32.mrb[28].mxu0  ;;  %v1541_v47 = vpop.f32.mrb[28].mxu1 }
 0x116   :  { %1422 = vst [vmem:[#allocation2 + $0x68] sm:$0xff] %v1318_v42   ;;  %1438 = vst [vmem:[#allocation2 + $0xe8] sm:$0xff] %v1398_v43   ;;  %v521_v48 = vadd.f32 %v1509_v46, %v1770_v38  ;;  %v649_v49 = vadd.f32 %v1541_v47, %v1770_v38  ;;  %v512_v50 = vpop.f32.mrb[29].mxu0  ;;  %v640_v51 = vpop.f32.mrb[29].mxu1 }
 0x117   :  { %1421 = vst [vmem:[#allocation2 + $0x60] sm:$0xff] %v1313_v44   ;;  %1437 = vst [vmem:[#allocation2 + $0xe0] sm:$0xff] %v1393_v45   ;;  %v513_v52 = vadd.f32 %v1770_v38, %v512_v50  ;;  %v641_v53 = vadd.f32 %v1770_v38, %v640_v51  ;;  %v1510_v54 = vpop.f32.mrb[30].mxu0  ;;  %v1542_v55 = vpop.f32.mrb[30].mxu1 }
 0x118   :  { %v524_v56 = vadd.f32 %v1510_v54, %v1770_v38  ;;  %v652_v57 = vadd.f32 %v1542_v55, %v1770_v38  ;;  %v515_v58 = vpop.f32.mrb[31].mxu0  ;;  %v643_v59 = vpop.f32.mrb[31].mxu1  ;;  %v685_v62 = vmax.f32 %v521_v48, 0.0  ;;  %v717_v63 = vmax.f32 %v649_v49, 0.0 }
 0x119   :  { %v516_v60 = vadd.f32 %v1770_v38, %v515_v58  ;;  %v644_v61 = vadd.f32 %v1770_v38, %v643_v59  ;;  %v683_v2 = vmax.f32 %v513_v52, 0.0  ;;  %v715_v3 = vmax.f32 %v641_v53, 0.0 }
 0x11a   :  { %v686_v0 = vmax.f32 %v524_v56, 0.0  ;;  %v718_v1 = vmax.f32 %v652_v57, 0.0 }
 0x11b   :  { %v684_v4 = vmax.f32 %v516_v60, 0.0  ;;  %v716_v5 = vmax.f32 %v644_v61, 0.0 }
 0x11c   :  { %v1328_v6 = vpack.c.bf16 %v686_v0, %v685_v62  ;;  %v1408_v7 = vpack.c.bf16 %v718_v1, %v717_v63 }
 0x11d   :  { %v1323_v8 = vpack.c.bf16 %v684_v4, %v683_v2  ;;  %v1403_v9 = vpack.c.bf16 %v716_v5, %v715_v3 }
 0x11e   :  { %1424 = vst [vmem:[#allocation2 + $0x78] sm:$0xff] %v1328_v6   ;;  %1440 = vst [vmem:[#allocation2 + $0xf8] sm:$0xff] %v1408_v7  }
 0x11f   :  { %1423 = vst [vmem:[#allocation2 + $0x70] sm:$0xff] %v1323_v8   ;;  %1439 = vst [vmem:[#allocation2 + $0xf0] sm:$0xff] %v1403_v9  }
 0x120   :  { %1596 = shalt.err (!%p1593_p4)
}
 0x121   :  { %s1597_s28 = scalar_lea.hbm %s1851_s3, 4096 }
 0x122   :  { %p1598_p5 = scmp.ne.s32.totalorder %s1851_s3, %s1597_s28  ;;  %p1601_p6 = scmp.lt.u32.totalorder %s1597_s28, %s1851_s3 }
 0x124   :  { %p1603_p7 = pnand %p1601_p6, %p1598_p5 }
 0x126   :  { %1606 = shalt.err (!%p1603_p7)
}
 0x127   :  { %s1611_s6 = smov 64   ;;  %s1612_s7 = smov 4  }
 0x128   :  { %1050 = dma.vmem_to_hbm [thread:$0]  %s1045_s2, 4096, %s1851_s3, [#allocation3], %s1611_s6, %s1611_s6, %s1612_s7  }
 0x129   :  { %1607 = dma.done.wait [#allocation3], 4096  }
 0x12a   :  { %1608 = vsyncadd [#allocation3], 4294963200 }
 0x12b   :  { %1054 = vsyncpa [#allocation3], 1 }

</bundles_post_ra>
